<compile_context>
chip_gen: v7x
topology: tpu7x:2x2x1
jax: 0.10.0
libtpu: 0.0.40
codegen_flags: <defaults>
</compile_context>

<pallas_src>
import functools

import jax
import jax.numpy as jnp
from jax.experimental import pallas as pl
from jax.experimental.pallas import tpu as pltpu

LN_EPS = 1e-5


# ---------------------------------------------------------------------------
# Kernel
# ---------------------------------------------------------------------------
def mlp_kernel(x_ref, w_ref, b_ref, out_ref):
    # x_ref: (6, TB) f32, batch on the lane dimension (TB multiple of 128).
    x = x_ref[...]

    # LayerNorm over the feature axis (sublane reduce over 6 rows), biased
    # variance (matches torch).  Affine is folded into the layer-1 weights.
    mean = jnp.mean(x, axis=0, keepdims=True)
    c = x - mean
    var = jnp.mean(c * c, axis=0, keepdims=True)
    h6 = c * jax.lax.rsqrt(var + LN_EPS)                      # (6, TB)

    # Layer 1: (20, 6) x (6, TB).  Weight rows >= 15 and their biases are
    # zero, so the padded output rows are exactly 0 after ReLU.
    w1 = w_ref[0, :, 0:6]                                     # (20, 6)
    h = jnp.maximum(
        jnp.dot(w1, h6, preferred_element_type=jnp.float32) + b_ref[0], 0.0)

    # Layers 2..4: uniform (20, 20) x (20, TB) matmuls.  Zero-padded weight
    # rows/cols and zero biases keep padded rows at exactly 0 through ReLU,
    # so results match the unpadded computation bit-for-bit.
    for i in range(1, 4):
        h = jnp.maximum(
            jnp.dot(w_ref[i], h, preferred_element_type=jnp.float32)
            + b_ref[i], 0.0)

    # Rows 0..5 hold the real output; rows 6..7 are exact zeros (padding).
    out_ref[...] = h[0:8, :]


# ---------------------------------------------------------------------------
# Parameter packing (call ONCE per parameter set; hoisted out of the forward)
# ---------------------------------------------------------------------------
def pack_params(params):
    """Fold LN affine into layer 1 and pack transposed weights/biases into
    two small slabs: wslab (4,20,20) zero-padded, bslab (4,20,1)."""
    (ln_w, ln_b, w1, b1, w2, b2, w3, b3, w4, b4) = params
    # W1' = diag(ln_w) @ W1 ; b1' = ln_b @ W1 + b1
    w1f = w1 * ln_w.reshape(-1, 1)                            # (6, 15)
    b1f = ln_b.reshape(1, -1) @ w1 + b1                       # (1, 15)

    layers = [(w1f, b1f), (w2, b2), (w3, b3), (w4, b4)]
    wslab = jnp.zeros((4, 20, 20), jnp.float32)
    bslab = jnp.zeros((4, 20, 1), jnp.float32)
    for i, (w, b) in enumerate(layers):
        wt = w.T                                              # (out_f, in_f)
        o, k = wt.shape
        wslab = wslab.at[i, :o, :k].set(wt)
        bslab = bslab.at[i, :o, 0].set(b.reshape(-1))
    return wslab, bslab


# ---------------------------------------------------------------------------
# Chip-aware tile selection
# ---------------------------------------------------------------------------
@functools.lru_cache(maxsize=None)
def _vmem_capacity_bytes():
    try:
        info = pltpu.get_tpu_info()
    except Exception:
        return 64 << 20  # conservative (v7x-sized) fallback
    for name in ("vmem_capacity_bytes", "vmem_size_bytes", "vmem_bytes"):
        val = getattr(info, name, None)
        if isinstance(val, int) and val > 0:
            return val
    return 64 << 20


def _choose_tile(batch):
    """Pick the batch tile TB (multiple of 128) and a matching VMEM limit."""
    vmem_cap = _vmem_capacity_bytes()
    if vmem_cap >= 100 * (1 << 20):        # v5e / v6e: 128 MiB VMEM
        cap_rows, chip_limit = 64 * 1024, 64 << 20
    else:                                  # v7x: 64 MiB VMEM, 2 TensorCores
        cap_rows, chip_limit = 32 * 1024, 32 << 20
    # Keep the grid length >= 2 (when the batch allows it) so the "parallel"
    # grid axis actually splits work across TensorCores / pipelines.
    half = (((batch + 1) // 2) + 127) // 128 * 128
    tb = max(128, min(cap_rows, half))
    # ~448*TB bytes are actually live (double-buffered (8,TB) in/out tiles plus
    # a few (24,TB) f32 intermediates); 768*TB leaves generous headroom.
    vmem_limit = int(min(chip_limit, max(16 << 20, 768 * tb)))
    return tb, vmem_limit


# ---------------------------------------------------------------------------
# Forward wrapper (jitted so pad/transpose/slice fuse into single passes)
# ---------------------------------------------------------------------------
@jax.jit
def test_model_forward(x, wslab, bslab):
    """x: (B, 6) f32 -> (B, 6) f32.

    Note: callers that can provide / consume feature-major (6, B) activations
    directly would skip the (fused) transpose passes entirely.
    """
    B, F = x.shape
    TB, vmem_limit = _choose_tile(B)
    Bp = pl.cdiv(B, TB) * TB

    # Feature-major, lane-dense, batch-padded input.  Pad columns are
    # independent garbage and are sliced off below.  Under jit this is a
    # single fused pad+transpose pass.
    xt = jnp.pad(x.T.astype(jnp.float32), ((0, 0), (0, Bp - B)))

    out_t = pl.pallas_call(
        mlp_kernel,
        out_shape=jax.ShapeDtypeStruct((8, Bp), jnp.float32),
        grid=(Bp // TB,),
        in_specs=[
            pl.BlockSpec((F, TB), lambda i: (0, i)),           # x tile (pipelined)
            pl.BlockSpec((4, 20, 20), lambda i: (0, 0, 0)),    # weight slab (resident)
            pl.BlockSpec((4, 20, 1), lambda i: (0, 0, 0)),     # bias slab (resident)
        ],
        out_specs=pl.BlockSpec((8, TB), lambda i: (0, i)),
        compiler_params=pltpu.CompilerParams(
            dimension_semantics=("parallel",),
            vmem_limit_bytes=vmem_limit,
        ),
    )(xt, wslab, bslab)

    return out_t[:F, :B].T


# ---------------------------------------------------------------------------
# Reference / init (for the self-check)
# ---------------------------------------------------------------------------
def init_params(key):
    """Deterministic init mirroring torch defaults:
    LayerNorm: weight=1, bias=0.
    Linear: uniform(-1/sqrt(fan_in), 1/sqrt(fan_in)) for weight and bias.
    Weights stored as (in, out) so the reference does x @ W."""
    def linear(k, fan_in, fan_out):
        k1, k2 = jax.random.split(k)
        bound = 1.0 / jnp.sqrt(float(fan_in))
        w = jax.random.uniform(k1, (fan_in, fan_out), jnp.float32, -bound, bound)
        b = jax.random.uniform(k2, (1, fan_out), jnp.float32, -bound, bound)
        return w, b

    k1, k2, k3, k4 = jax.random.split(key, 4)
    ln_w = jnp.ones((1, 6), jnp.float32)
    ln_b = jnp.zeros((1, 6), jnp.float32)
    w1, b1 = linear(k1, 6, 15)
    w2, b2 = linear(k2, 15, 20)
    w3, b3 = linear(k3, 20, 15)
    w4, b4 = linear(k4, 15, 6)
    return (ln_w, ln_b, w1, b1, w2, b2, w3, b3, w4, b4)


def reference_forward(x, params):
    (ln_w, ln_b, w1, b1, w2, b2, w3, b3, w4, b4) = params
    mean = jnp.mean(x, axis=-1, keepdims=True)
    var = jnp.mean((x - mean) ** 2, axis=-1, keepdims=True)
    h = (x - mean) / jnp.sqrt(var + LN_EPS) * ln_w + ln_b
    h = jax.nn.relu(h @ w1 + b1)
    h = jax.nn.relu(h @ w2 + b2)
    h = jax.nn.relu(h @ w3 + b3)
    h = jax.nn.relu(h @ w4 + b4)
    return h


if __name__ == "__main__":
    key = jax.random.PRNGKey(0)
    kx, kp = jax.random.split(key)

    B = 300  # non-multiple of the tile: exercises a 2-step grid + padded remainder
    x = jax.random.normal(kx, (B, 6), dtype=jnp.float32)
    params = init_params(kp)

    # Hoisted out of the per-call path: packed once per parameter set.
    wslab, bslab = pack_params(params)

    out = test_model_forward(x, wslab, bslab)
    jax.block_until_ready(out)

    ref = reference_forward(x, params)
    assert out.shape == (B, 6), out.shape
    assert jnp.allclose(out, ref, atol=1e-5, rtol=1e-5), "mismatch vs reference"
    print("KERNEL_OK")
</pallas_src>

<mosaic_0001>
module attributes {stable_mosaic.version = 11 : i64} {
  func.func @mlp_kernel(%arg0: i32, %arg1: memref<6x256xf32, #tpu.memory_space<vmem>>, %arg2: memref<4x20x20xf32, #tpu.memory_space<vmem>>, %arg3: memref<4x20x1xf32, #tpu.memory_space<vmem>>, %arg4: memref<8x256xf32, #tpu.memory_space<vmem>>) attributes {dimension_semantics = [#tpu.dimension_semantics<parallel>], iteration_bounds = array<i64: 2>, scalar_prefetch = 0 : i64, scratch_operands = 0 : i64, tpu.core_type = #tpu.core_type<tc>, window_params = [{transform_indices = @transform_0, window_bounds = array<i64: 6, 256>}, {pipeline_mode = #tpu.pipeline_mode<synchronous>, transform_indices = @transform_1, window_bounds = array<i64: 4, 20, 20>}, {pipeline_mode = #tpu.pipeline_mode<synchronous>, transform_indices = @transform_2, window_bounds = array<i64: 4, 20, 1>}, {transform_indices = @transform_3, window_bounds = array<i64: 8, 256>}]} {
    %c0 = arith.constant 0 : index
    %c0_0 = arith.constant 0 : index
    %0 = vector.load %arg1[%c0, %c0_0] : memref<6x256xf32, #tpu.memory_space<vmem>>, vector<6x256xf32>
    %cst = arith.constant dense<0.000000e+00> : vector<256xf32>
    %1 = vector.multi_reduction <add>, %0, %cst [0] : vector<6x256xf32> to vector<256xf32>
    %2 = vector.shape_cast %1 : vector<256xf32> to vector<1x256xf32>
    %cst_1 = arith.constant 6.000000e+00 : f32
    %3 = vector.broadcast %cst_1 : f32 to vector<1x256xf32>
    %4 = arith.divf %2, %3 : vector<1x256xf32>
    %5 = vector.broadcast %4 : vector<1x256xf32> to vector<6x256xf32>
    %6 = arith.subf %0, %5 : vector<6x256xf32>
    %7 = arith.mulf %6, %6 : vector<6x256xf32>
    %cst_2 = arith.constant dense<0.000000e+00> : vector<256xf32>
    %8 = vector.multi_reduction <add>, %7, %cst_2 [0] : vector<6x256xf32> to vector<256xf32>
    %9 = vector.shape_cast %8 : vector<256xf32> to vector<1x256xf32>
    %cst_3 = arith.constant 6.000000e+00 : f32
    %10 = vector.broadcast %cst_3 : f32 to vector<1x256xf32>
    %11 = arith.divf %9, %10 : vector<1x256xf32>
    %cst_4 = arith.constant 9.99999974E-6 : f32
    %12 = vector.broadcast %cst_4 : f32 to vector<1x256xf32>
    %13 = arith.addf %11, %12 : vector<1x256xf32>
    %14 = math.rsqrt %13 : vector<1x256xf32>
    %15 = vector.broadcast %14 : vector<1x256xf32> to vector<6x256xf32>
    %16 = arith.mulf %6, %15 : vector<6x256xf32>
    %c0_5 = arith.constant 0 : index
    %c0_6 = arith.constant 0 : index
    %c0_7 = arith.constant 0 : index
    %17 = vector.load %arg2[%c0_5, %c0_6, %c0_7] : memref<4x20x20xf32, #tpu.memory_space<vmem>>, vector<1x20x6xf32>
    %18 = vector.shape_cast %17 : vector<1x20x6xf32> to vector<20x6xf32>
    %cst_8 = arith.constant dense<0.000000e+00> : vector<20x256xf32>
    %19 = tpu.matmul %18, %16, %cst_8 {dimension_numbers = #tpu.dot_dimension_numbers<[1], [0], [0], [1], [0, 0, 1, 1], [], []>} : vector<20x6xf32>, vector<6x256xf32>, vector<20x256xf32> -> vector<20x256xf32>
    %c0_9 = arith.constant 0 : index
    %c0_10 = arith.constant 0 : index
    %c0_11 = arith.constant 0 : index
    %20 = vector.load %arg3[%c0_9, %c0_10, %c0_11] : memref<4x20x1xf32, #tpu.memory_space<vmem>>, vector<1x20x1xf32>
    %21 = vector.shape_cast %20 : vector<1x20x1xf32> to vector<20x1xf32>
    %22 = vector.broadcast %21 : vector<20x1xf32> to vector<20x256xf32>
    %23 = arith.addf %19, %22 : vector<20x256xf32>
    %cst_12 = arith.constant 0.000000e+00 : f32
    %24 = vector.broadcast %cst_12 : f32 to vector<20x256xf32>
    %25 = arith.maximumf %23, %24 : vector<20x256xf32>
    %c1 = arith.constant 1 : index
    %c0_13 = arith.constant 0 : index
    %c0_14 = arith.constant 0 : index
    %26 = vector.load %arg2[%c1, %c0_13, %c0_14] : memref<4x20x20xf32, #tpu.memory_space<vmem>>, vector<1x20x20xf32>
    %27 = vector.shape_cast %26 : vector<1x20x20xf32> to vector<20x20xf32>
    %cst_15 = arith.constant dense<0.000000e+00> : vector<20x256xf32>
    %28 = tpu.matmul %27, %25, %cst_15 {dimension_numbers = #tpu.dot_dimension_numbers<[1], [0], [0], [1], [0, 0, 1, 1], [], []>} : vector<20x20xf32>, vector<20x256xf32>, vector<20x256xf32> -> vector<20x256xf32>
    %c1_16 = arith.constant 1 : index
    %c0_17 = arith.constant 0 : index
    %c0_18 = arith.constant 0 : index
    %29 = vector.load %arg3[%c1_16, %c0_17, %c0_18] : memref<4x20x1xf32, #tpu.memory_space<vmem>>, vector<1x20x1xf32>
    %30 = vector.shape_cast %29 : vector<1x20x1xf32> to vector<20x1xf32>
    %31 = vector.broadcast %30 : vector<20x1xf32> to vector<20x256xf32>
    %32 = arith.addf %28, %31 : vector<20x256xf32>
    %cst_19 = arith.constant 0.000000e+00 : f32
    %33 = vector.broadcast %cst_19 : f32 to vector<20x256xf32>
    %34 = arith.maximumf %32, %33 : vector<20x256xf32>
    %c2 = arith.constant 2 : index
    %c0_20 = arith.constant 0 : index
    %c0_21 = arith.constant 0 : index
    %35 = vector.load %arg2[%c2, %c0_20, %c0_21] : memref<4x20x20xf32, #tpu.memory_space<vmem>>, vector<1x20x20xf32>
    %36 = vector.shape_cast %35 : vector<1x20x20xf32> to vector<20x20xf32>
    %cst_22 = arith.constant dense<0.000000e+00> : vector<20x256xf32>
    %37 = tpu.matmul %36, %34, %cst_22 {dimension_numbers = #tpu.dot_dimension_numbers<[1], [0], [0], [1], [0, 0, 1, 1], [], []>} : vector<20x20xf32>, vector<20x256xf32>, vector<20x256xf32> -> vector<20x256xf32>
    %c2_23 = arith.constant 2 : index
    %c0_24 = arith.constant 0 : index
    %c0_25 = arith.constant 0 : index
    %38 = vector.load %arg3[%c2_23, %c0_24, %c0_25] : memref<4x20x1xf32, #tpu.memory_space<vmem>>, vector<1x20x1xf32>
    %39 = vector.shape_cast %38 : vector<1x20x1xf32> to vector<20x1xf32>
    %40 = vector.broadcast %39 : vector<20x1xf32> to vector<20x256xf32>
    %41 = arith.addf %37, %40 : vector<20x256xf32>
    %cst_26 = arith.constant 0.000000e+00 : f32
    %42 = vector.broadcast %cst_26 : f32 to vector<20x256xf32>
    %43 = arith.maximumf %41, %42 : vector<20x256xf32>
    %c3 = arith.constant 3 : index
    %c0_27 = arith.constant 0 : index
    %c0_28 = arith.constant 0 : index
    %44 = vector.load %arg2[%c3, %c0_27, %c0_28] : memref<4x20x20xf32, #tpu.memory_space<vmem>>, vector<1x20x20xf32>
    %45 = vector.shape_cast %44 : vector<1x20x20xf32> to vector<20x20xf32>
    %cst_29 = arith.constant dense<0.000000e+00> : vector<20x256xf32>
    %46 = tpu.matmul %45, %43, %cst_29 {dimension_numbers = #tpu.dot_dimension_numbers<[1], [0], [0], [1], [0, 0, 1, 1], [], []>} : vector<20x20xf32>, vector<20x256xf32>, vector<20x256xf32> -> vector<20x256xf32>
    %c3_30 = arith.constant 3 : index
    %c0_31 = arith.constant 0 : index
    %c0_32 = arith.constant 0 : index
    %47 = vector.load %arg3[%c3_30, %c0_31, %c0_32] : memref<4x20x1xf32, #tpu.memory_space<vmem>>, vector<1x20x1xf32>
    %48 = vector.shape_cast %47 : vector<1x20x1xf32> to vector<20x1xf32>
    %49 = vector.broadcast %48 : vector<20x1xf32> to vector<20x256xf32>
    %50 = arith.addf %46, %49 : vector<20x256xf32>
    %cst_33 = arith.constant 0.000000e+00 : f32
    %51 = vector.broadcast %cst_33 : f32 to vector<20x256xf32>
    %52 = arith.maximumf %50, %51 : vector<20x256xf32>
    %53 = vector.extract_strided_slice %52 {offsets = [0, 0], sizes = [8, 256], strides = [1, 1]} : vector<20x256xf32> to vector<8x256xf32>
    %c0_34 = arith.constant 0 : index
    %c0_35 = arith.constant 0 : index
    %54 = vector.load %arg4[%c0_34, %c0_35] : memref<8x256xf32, #tpu.memory_space<vmem>>, vector<8x256xf32>
    tpu.vector_store %arg4[%c0_34, %c0_35], %53 {strides = array<i32>} : memref<8x256xf32, #tpu.memory_space<vmem>>, vector<8x256xf32>,
    return
  }
  func.func @transform_0(%arg0: i32) -> (i32, i32) {
    %c0_i32 = arith.constant 0 : i32
    %c0_i32_0 = arith.constant 0 : i32
    return %c0_i32, %arg0 : i32, i32
  }
  func.func @transform_1(%arg0: i32) -> (i32, i32, i32) {
    %c0_i32 = arith.constant 0 : i32
    %c0_i32_0 = arith.constant 0 : i32
    %c0_i32_1 = arith.constant 0 : i32
    %c0_i32_2 = arith.constant 0 : i32
    return %c0_i32, %c0_i32_0, %c0_i32_1 : i32, i32, i32
  }
  func.func @transform_2(%arg0: i32) -> (i32, i32, i32) {
    %c0_i32 = arith.constant 0 : i32
    %c0_i32_0 = arith.constant 0 : i32
    %c0_i32_1 = arith.constant 0 : i32
    %c0_i32_2 = arith.constant 0 : i32
    return %c0_i32, %c0_i32_0, %c0_i32_1 : i32, i32, i32
  }
  func.func @transform_3(%arg0: i32) -> (i32, i32) {
    %c0_i32 = arith.constant 0 : i32
    %c0_i32_0 = arith.constant 0 : i32
    return %c0_i32, %arg0 : i32, i32
  }
}

</mosaic_0001>

<bundles_post_ra>
// kernel: test_model_forward.1
= control target key start
LH: loop header
LB: loop body
LE: loop exit
PB: predicated region body
PF: predicated region fallthrough
CT: control target
= control target key end

     0   :  { %s884_s12 = smov 0   ;;  %s1007_s0 = inlined_call_operand.vmem [shape: f32[6,512], index: 0, kind: input, shape index: {}]   ;;  %s1008_s1 = inlined_call_operand.vmem [shape: f32[4,20,20], index: 1, kind: input, shape index: {}]   ;;  %s1009_s2 = inlined_call_operand.vmem [shape: f32[4,20,1], index: 2, kind: input, shape index: {}]   ;;  %s1010_s3 = inlined_call_operand.vmem [shape: f32[8,512], index: 3, kind: output, shape index: {}]  }
   0x1 LB: > { %s777_s13 = sadd.s32 4294967295, %s860_s12   ;;  %p781_p0 = scmp.ge.s32.totalorder %s860_s12, 1  ;;  %s860_s12 = sphi %s884_s12, %s13_s12  }
   0x2   : > { %p138_p1 = scmp.lt.s32.totalorder %s860_s12, 3 }
   0x4   : > { %p139_p2 = pnand %p781_p0, %p138_p1 }
   0x5   : > { %s782_s14 = sshll.u32 (!%p139_p2), %s777_s13, 1  ;;  %v862_v0 = vmov (!%p139_p2), 0.0   ;;  %v223_v1 = vld [vmem:[%s1009_s2] sm:$0xff] (!%p139_p2)  ;;  %v863_v2 = vmov (!%p139_p2), 0   ;;  %v225_v3 = vld [vmem:[%s1009_s2 + $0x10] sm:$0xf] (!%p139_p2) }
   0x6   : > { %142 = sbr.rel (%p139_p2) target bundleno = 976 (0x3d0), region = 32  ;;  %p163_p3 = scmp.lt.s32.totalorder (!%p139_p2), %s782_s14, 3  ;;  %321 = vmatprep.mubr.f32.mxu0 (!%p139_p2), %v862_v0  ;;  %450 = vmatprep.mubr.f32.mxu1 (!%p139_p2), %v862_v0  ;;  %v224_v4 = vld [vmem:[%s1009_s2 + $0x8] sm:$0xff] (!%p139_p2)  ;;  %v794_v5 = vld [vmem:[%s1009_s2 + $0x18] sm:$0xff] (!%p139_p2)  ;;  %vm176_vm0 = vcmask (!%p139_p2), 1045504   ;;  %v795_v10 = vld [vmem:[%s1009_s2 + $0x20] sm:$0xff] (!%p139_p2) }
   0x7   : > { %848 = vset.pattern.permute.xlu0 (!%p139_p2), %v863_v2  ;;  %849 = vset.pattern.permute.xlu1 (!%p139_p2), %v863_v2  ;;  %v796_v11 = vld [vmem:[%s1009_s2 + $0x28] sm:$0xf] (!%p139_p2)  ;;  %v805_v16 = vld [vmem:[%s1009_s2 + $0x30] sm:$0xff] (!%p139_p2)  ;;  %v806_v17 = vld [vmem:[%s1009_s2 + $0x38] sm:$0xff] (!%p139_p2)  ;;  %vm241_vm1 = vcmask (!%p139_p2), 48128   ;;  %vm379_vm2 = vcmask (!%p139_p2), 1043456  }
   0x8   : > { %228 = vperm.xlu0 (!%p139_p2), %848, %v223_v1   ;;  %238 = vperm.xlu1 (!%p139_p2), %849, %v225_v3   ;;  %v807_v22 = vld [vmem:[%s1009_s2 + $0x40] sm:$0xf] (!%p139_p2)  ;;  %v816_v23 = vld [vmem:[%s1009_s2 + $0x48] sm:$0xff] (!%p139_p2)  ;;  %v222_v58 = vld [vmem:[%s1008_s1 + $0x10] sm:$0xf] (!%p139_p2)  ;;  %vm369_vm3 = vcmask (!%p139_p2), 162816  }
   0x9   : > { %v220_v56 = vld [vmem:[%s1008_s1] sm:$0xff] (!%p139_p2)  ;;  %v221_v57 = vld [vmem:[%s1008_s1 + $0x8] sm:$0xff] (!%p139_p2) }
   0xc   : > { %233 = vperm.xlu0 (!%p139_p2), %848, %v224_v4   ;;  %356 = vperm.xlu1 (!%p139_p2), %849, %v794_v5  }
   0xd   : > { %s1012_s14 = smov (!%p163_p3, %s782_s14), 3 }
   0xe   : > { %s783_s23 = sshll.u32 %s1012_s14, 3 }
   0xf   : > { %s166_s26 = scalar_lea.vmem %s1007_s0, %s783_s23  ;;  %s172_s16 = scalar_lea.vmem %s1010_s3, %s783_s23 }
  0x10   : > { %v174_v6 = vld [vmem:[%s166_s26] sm:$0x3f]  ;;  %v175_v7 = vld [vmem:[%s166_s26 + $0x8] sm:$0x3f]  ;;  %361 = vperm.xlu0 %848, %v795_v10   ;;  %366 = vperm.xlu1 %849, %v796_v11  }
  0x11   : > { %v177_v8 = vsel %vm176_vm0, %v174_v6, 0.0  ;;  %v184_v9 = vsel %vm176_vm0, %v175_v7, 0.0 }
  0x12   : > { %v178_v12 = vrot.slane %v177_v8, 4  ;;  %v185_v13 = vrot.slane %v184_v9, 4 }
  0x14   : > { %v179_v14 = vadd.f32 %v178_v12, %v177_v8  ;;  %v186_v15 = vadd.f32 %v185_v13, %v184_v9  ;;  %485 = vperm.xlu0 %848, %v805_v16   ;;  %490 = vperm.xlu1 %849, %v806_v17  }
  0x16   : > { %v180_v18 = vrot.slane %v179_v14, 2  ;;  %v187_v19 = vrot.slane %v186_v15, 2 }
  0x18   : > { %v188_v20 = vadd.f32 %v187_v19, %v186_v15  ;;  %v181_v21 = vadd.f32 %v180_v18, %v179_v14  ;;  %495 = vperm.xlu0 %848, %v807_v22   ;;  %612 = vperm.xlu1 %849, %v816_v23   ;;  %v791_v19 = vld [vmem:[%s1008_s1 + $0x18] sm:$0xff] }
  0x1a   : > { %v189_v24 = vrot.slane %v188_v20, 1  ;;  %v182_v25 = vrot.slane %v181_v21, 1 }
  0x1c   : > { %v190_v26 = vadd.f32 %v189_v24, %v188_v20  ;;  %v183_v27 = vadd.f32 %v182_v25, %v181_v21  ;;  %v792_v20 = vld [vmem:[%s1008_s1 + $0x20] sm:$0xff]  ;;  %v793_v21 = vld [vmem:[%s1008_s1 + $0x28] sm:$0xf] }
  0x1e   : > { %v193_v28 = vmul.f32 0.16666667, %v190_v26  ;;  %v192_v29 = vmul.f32 0.16666667, %v183_v27 }
  0x20   : > { %v195_v30 = vsub.f32 %v175_v7, %v193_v28  ;;  %v194_v31 = vsub.f32 %v174_v6, %v192_v29 }
  0x22   : > { %v197_v32 = vmul.f32 %v195_v30, %v195_v30  ;;  %v196_v33 = vmul.f32 %v194_v31, %v194_v31 }
  0x24   : > { %v205_v34 = vsel %vm176_vm0, %v197_v32, 0.0  ;;  %v198_v35 = vsel %vm176_vm0, %v196_v33, 0.0 }
  0x25   : > { %v206_v36 = vrot.slane %v205_v34, 4  ;;  %v199_v37 = vrot.slane %v198_v35, 4 }
  0x27   : > { %v207_v38 = vadd.f32 %v206_v36, %v205_v34  ;;  %v200_v39 = vadd.f32 %v199_v37, %v198_v35 }
  0x29   : > { %v208_v40 = vrot.slane %v207_v38, 2  ;;  %v201_v41 = vrot.slane %v200_v39, 2 }
  0x2b   : > { %v209_v42 = vadd.f32 %v208_v40, %v207_v38  ;;  %v202_v43 = vadd.f32 %v201_v41, %v200_v39 }
  0x2d   : > { %v210_v44 = vrot.slane %v209_v42, 1  ;;  %v203_v45 = vrot.slane %v202_v43, 1 }
  0x2f   : > { %v211_v46 = vadd.f32 %v210_v44, %v209_v42  ;;  %v204_v47 = vadd.f32 %v203_v45, %v202_v43  ;;  %v802_v45 = vld [vmem:[%s1008_s1 + $0x30] sm:$0xff] }
  0x31   : > { %v213_v48 = vmul.f32 0.16666667, %v211_v46  ;;  %v212_v49 = vmul.f32 0.16666667, %v204_v47  ;;  %v803_v46 = vld [vmem:[%s1008_s1 + $0x38] sm:$0xff] }
  0x32   : > { %v804_v47 = vld [vmem:[%s1008_s1 + $0x40] sm:$0xf] }
  0x33   : > { %v215_v50 = vadd.f32 1e-05, %v213_v48  ;;  %v214_v51 = vadd.f32 1e-05, %v212_v49 }
  0x35   : > { %850 = vrsqrt.f32 %v215_v50 }
  0x36   : > { %852 = vrsqrt.f32 %v214_v51 }
  0x3f   : > { %v851_v52 = vpop.eup %850 }
  0x40   : > { %v853_v53 = vpop.eup %852  ;;  %v219_v54 = vmul.f32 %v851_v52, %v195_v30 }
  0x41   : > { %v218_v55 = vmul.f32 %v853_v53, %v194_v31 }
  0x42   : > { %786 = vmatprep.subr.msk.mxu0 %vm176_vm0, %v219_v54 }
  0x43   : > { %787 = vmatpush1.msk.msra.mxu0 %vm176_vm0, %v218_v55 }
  0x44   : > { %788 = vmatmul.mubr.msk.f32.vlgmr.msra.gmra.mrb[0].mxu0 %vm241_vm1, %v220_v56 }
  0x45   : > { %327 = vmatprep.mubr.f32.mxu0 %v862_v0 }
  0x48   : > { %789 = vmatmul.mubr.msk.f32.gmra.mrb[2].mxu0 %vm241_vm1, %v221_v57 }
  0x49   : > { %333 = vmatprep.mubr.f32.mxu0 %v862_v0 }
  0x4c   : > { %790 = vmatmul.mubr.msk.f32.gmra.mrb[4].mxu0 %vm241_vm1, %v222_v58 }
  0x4d   : > { %577 = vmatprep.mubr.f32.mxu0 %v862_v0 }
  0x87   : > { %v229_v59 = vpop.permute.xlu0 %228  ;;  %v239_v11 = vpop.permute.xlu1 %238 }
  0x8b   : > { %v234_v63 = vpop.permute.xlu0 %233  ;;  %v357_v24 = vpop.permute.xlu1 %356 }
  0x8f   : > { %v362_v26 = vpop.permute.xlu0 %361  ;;  %v367_v37 = vpop.permute.xlu1 %366 }
  0x93   : > { %v486_v50 = vpop.permute.xlu0 %485  ;;  %v491_v52 = vpop.permute.xlu1 %490 }
 0x117   : > { %v323_v60 = vpop.f32.mrb[0].mxu0 }
 0x118   : > { %v325_v61 = vpop.f32.mrb[1].mxu0  ;;  %v324_v62 = vadd.f32 %v323_v60, %v229_v59 }
 0x119   : > { %v326_v1 = vadd.f32 %v325_v61, %v229_v59 }
 0x11a   : > { %v340_v6 = vmax.f32 %v324_v62, 0.0 }
 0x11b   : > { %v329_v2 = vpop.f32.mrb[2].mxu0  ;;  %v341_v8 = vmax.f32 %v326_v1, 0.0 }
 0x11c   : > { %v330_v3 = vadd.f32 %v329_v2, %v234_v63  ;;  %v331_v4 = vpop.f32.mrb[3].mxu0 }
 0x11d   : > { %v332_v5 = vadd.f32 %v331_v4, %v234_v63  ;;  %v496_v63 = vpop.permute.xlu0 %495 }
 0x11e   : > { %v342_v7 = vmax.f32 %v330_v3, 0.0 }
 0x11f   : > { %v343_v9 = vmax.f32 %v332_v5, 0.0  ;;  %v335_v10 = vpop.f32.mrb[4].mxu0 }
 0x120   : > { %v337_v12 = vpop.f32.mrb[5].mxu0  ;;  %v828_v13 = vpack.c.bf16 %v342_v7, %v340_v6  ;;  %v336_v16 = vadd.f32 %v335_v10, %v239_v11  ;;  %v815_v10 = vld [vmem:[%s1008_s1 + $0x58] sm:$0xf] }
 0x121   : > { %v338_v14 = vadd.f32 %v337_v12, %v239_v11  ;;  %v826_v15 = vpack.c.bf16 %v343_v9, %v341_v8  ;;  %v813_v8 = vld [vmem:[%s1008_s1 + $0x48] sm:$0xff]  ;;  %v814_v9 = vld [vmem:[%s1008_s1 + $0x50] sm:$0xff]  ;;  %v613_v11 = vpop.permute.xlu1 %612 }
 0x122   : > { %v344_v18 = vmax.f32 %v336_v16, 0.0 }
 0x123   : > { %v345_v17 = vmax.f32 %v338_v14, 0.0  ;;  %827 = vmatprep.subr.bf16.mxu1 %v826_v15 }
 0x124   : > { %829 = vmatpush1.bf16.msra.mxu1 %v828_v13 }
 0x125   : > { %797 = vmatprep.subr.msk.mxu1 %vm379_vm2, %v345_v17 }
 0x128   : > { %798 = vmatpush1.msk.msra.mxu1 %vm379_vm2, %v344_v18 }
 0x129   : > { %799 = vmatmul.mubr.msk.f32.vlgmr.msra.gmra.mrb[0].mxu1 %vm369_vm3, %v791_v19 }
 0x12a   : > { %456 = vmatprep.mubr.f32.mxu1 %v862_v0 }
 0x12d   : > { %800 = vmatmul.mubr.msk.f32.gmra.mrb[2].mxu1 %vm369_vm3, %v792_v20 }
 0x12e   : > { %462 = vmatprep.mubr.f32.mxu1 %v862_v0 }
 0x131   : > { %801 = vmatmul.mubr.msk.f32.gmra.mrb[4].mxu1 %vm369_vm3, %v793_v21 }
 0x132   : > { %702 = vmatprep.mubr.f32.mxu1 %v862_v0 }
 0x1fc   : > { %v452_v22 = vpop.f32.mrb[0].mxu1 }
 0x1fd   : > { %v454_v23 = vpop.f32.mrb[1].mxu1  ;;  %v453_v25 = vadd.f32 %v452_v22, %v357_v24 }
 0x1fe   : > { %v455_v27 = vadd.f32 %v454_v23, %v357_v24 }
 0x1ff   : > { %v469_v32 = vmax.f32 %v453_v25, 0.0 }
 0x200   : > { %v458_v28 = vpop.f32.mrb[2].mxu1  ;;  %v470_v34 = vmax.f32 %v455_v27, 0.0 }
 0x201   : > { %v459_v29 = vadd.f32 %v458_v28, %v362_v26  ;;  %v460_v30 = vpop.f32.mrb[3].mxu1 }
 0x202   : > { %v461_v31 = vadd.f32 %v460_v30, %v362_v26 }
 0x203   : > { %v471_v33 = vmax.f32 %v459_v29, 0.0 }
 0x204   : > { %v472_v35 = vmax.f32 %v461_v31, 0.0  ;;  %v464_v36 = vpop.f32.mrb[4].mxu1 }
 0x205   : > { %v832_v38 = vpack.c.bf16 %v471_v33, %v469_v32  ;;  %v466_v39 = vpop.f32.mrb[5].mxu1  ;;  %v465_v42 = vadd.f32 %v464_v36, %v367_v37 }
 0x206   : > { %v830_v40 = vpack.c.bf16 %v472_v35, %v470_v34  ;;  %v467_v41 = vadd.f32 %v466_v39, %v367_v37 }
 0x207   : > { %v473_v44 = vmax.f32 %v465_v42, 0.0 }
 0x208   : > { %v474_v43 = vmax.f32 %v467_v41, 0.0  ;;  %831 = vmatprep.subr.bf16.mxu0 %v830_v40 }
 0x209   : > { %833 = vmatpush1.bf16.msra.mxu0 %v832_v38 }
 0x20a   : > { %808 = vmatprep.subr.msk.mxu0 %vm379_vm2, %v474_v43 }
 0x20d   : > { %809 = vmatpush1.msk.msra.mxu0 %vm379_vm2, %v473_v44 }
 0x20e   : > { %810 = vmatmul.mubr.msk.f32.vlgmr.msra.gmra.mrb[6].mxu0 %vm369_vm3, %v802_v45 }
 0x20f   : > { %583 = vmatprep.mubr.f32.mxu0 %v862_v0 }
 0x212   : > { %811 = vmatmul.mubr.msk.f32.gmra.mrb[8].mxu0 %vm369_vm3, %v803_v46 }
 0x213   : > { %589 = vmatprep.mubr.f32.mxu0 %v862_v0 }
 0x216   : > { %812 = vmatmul.mubr.msk.f32.gmra.mrb[10].mxu0 %vm369_vm3, %v804_v47 }
 0x2e1   : > { %v579_v48 = vpop.f32.mrb[6].mxu0 }
 0x2e2   : > { %v581_v49 = vpop.f32.mrb[7].mxu0  ;;  %v580_v51 = vadd.f32 %v579_v48, %v486_v50 }
 0x2e3   : > { %v582_v53 = vadd.f32 %v581_v49, %v486_v50 }
 0x2e4   : > { %v596_v58 = vmax.f32 %v580_v51, 0.0 }
 0x2e5   : > { %v585_v54 = vpop.f32.mrb[8].mxu0  ;;  %v597_v60 = vmax.f32 %v582_v53, 0.0 }
 0x2e6   : > { %v586_v55 = vadd.f32 %v585_v54, %v491_v52  ;;  %v587_v56 = vpop.f32.mrb[9].mxu0 }
 0x2e7   : > { %v588_v57 = vadd.f32 %v587_v56, %v491_v52 }
 0x2e8   : > { %v598_v59 = vmax.f32 %v586_v55, 0.0 }
 0x2e9   : > { %v599_v61 = vmax.f32 %v588_v57, 0.0  ;;  %v591_v62 = vpop.f32.mrb[10].mxu0 }
 0x2ea   : > { %v836_v1 = vpack.c.bf16 %v598_v59, %v596_v58  ;;  %v593_v2 = vpop.f32.mrb[11].mxu0  ;;  %v592_v5 = vadd.f32 %v591_v62, %v496_v63 }
 0x2eb   : > { %v834_v3 = vpack.c.bf16 %v599_v61, %v597_v60  ;;  %v594_v4 = vadd.f32 %v593_v2, %v496_v63 }
 0x2ec   : > { %v600_v7 = vmax.f32 %v592_v5, 0.0 }
 0x2ed   : > { %v601_v6 = vmax.f32 %v594_v4, 0.0  ;;  %835 = vmatprep.subr.bf16.mxu1 %v834_v3 }
 0x2ee   : > { %837 = vmatpush1.bf16.msra.mxu1 %v836_v1 }
 0x2ef   : > { %819 = vmatprep.subr.msk.mxu1 %vm379_vm2, %v601_v6 }
 0x2f2   : > { %820 = vmatpush1.msk.msra.mxu1 %vm379_vm2, %v600_v7 }
 0x2f3   : > { %821 = vmatmul.mubr.msk.f32.vlgmr.msra.gmra.mrb[6].mxu1 %vm369_vm3, %v813_v8 }
 0x2f4   : > { %708 = vmatprep.mubr.f32.mxu1 %v862_v0 }
 0x2f7   : > { %822 = vmatmul.mubr.msk.f32.gmra.mrb[8].mxu1 %vm369_vm3, %v814_v9 }
 0x2f8   : > { %712 = vmatprep.mubr.f32.mxu1 %v862_v0 }
 0x2fb   : > { %823 = vmatmul.mubr.msk.f32.gmra.mrb[10].mxu1 %vm369_vm3, %v815_v10 }
 0x3c6   : > { %v704_v12 = vpop.f32.mrb[6].mxu1 }
 0x3c7   : > { %v705_v13 = vadd.f32 %v704_v12, %v613_v11  ;;  %v706_v14 = vpop.f32.mrb[7].mxu1 }
 0x3c8   : > { %v707_v15 = vadd.f32 %v706_v14, %v613_v11 }
 0x3c9   : > { %v717_v16 = vmax.f32 %v705_v13, 0.0 }
 0x3ca   : > { %v718_v17 = vmax.f32 %v707_v15, 0.0  ;;  %v710_v18 = vpop.f32.mrb[8].mxu1 }
 0x3cb   : > { %719 = vst [vmem:[%s172_s16] sm:$0xff] %v717_v16  ;;  %v711_v0 = vpop.f32.mrb[9].mxu1 }
 0x3cc   : > { %720 = vst [vmem:[%s172_s16 + $0x8] sm:$0xff] %v718_v17 }
 0x3ce   : > { %v714_v19 = vpop.f32.mrb[10].mxu1 }
 0x3cf   : > { %v715_v20 = vpop.f32.mrb[11].mxu1 }
 0x3d0 PF: > { %s13_s12 = sadd.s32 1, %s860_s12  }
 0x3d1   : > { %p10_p4 = scmp.ge.s32.totalorder %s13_s12, 4  }
 0x3d3   :  { %12 = sbr.rel (!%p10_p4) target bundleno = 1 (0x1), region = 68 }

</bundles_post_ra>
